<compile_context>
chip_gen: v7x
topology: tpu7x:2x2x1
jax: 0.10.0
libtpu: 0.0.40
codegen_flags: <defaults>
</compile_context>

<pallas_src>
import math

import jax
import jax.numpy as jnp
from jax import lax
from jax.experimental import pallas as pl
from jax.experimental.pallas import tpu as pltpu


def _bigram_head_kernel(idx_ref, tab_ref, pos_ref, w_ref, b_ref, out_ref):
    """One (TM, V_pad) tile of logits = (tok_emb[idx] + pos_emb) @ W + b."""
    tm = idx_ref.shape[0]
    vocab = tab_ref.shape[0]
    c = pos_ref.shape[0]

    # Token-embedding gather as an exact one-hot matmul on the MXU (the table
    # is tiny and stays resident in VMEM; one-hot rows are exact 0/1 so the
    # gathered embeddings are bit-exact f32).
    tok_oh = (idx_ref[...] ==
              lax.broadcasted_iota(jnp.int32, (tm, vocab), 1)).astype(jnp.float32)
    tok = jnp.dot(tok_oh, tab_ref[...], preferred_element_type=jnp.float32)

    # Position-embedding broadcast: flattened row r uses pos_emb[r % C]; tiles
    # start at multiples of C, so the pattern is tile-invariant.
    pos_oh = (lax.broadcasted_iota(jnp.int32, (tm, c), 0) % c ==
              lax.broadcasted_iota(jnp.int32, (tm, c), 1)).astype(jnp.float32)
    pos = jnp.dot(pos_oh, pos_ref[...], preferred_element_type=jnp.float32)

    # Elementwise add in f32 (v5e-friendly), bf16 operands for the MXU,
    # f32 accumulation; output block is lane-dense (V padded to 128).
    x = (tok + pos).astype(jnp.bfloat16)
    out_ref[...] = (
        jnp.dot(x, w_ref[...], preferred_element_type=jnp.float32) + b_ref[...]
    )


def init_params(key, vocab_size, embedding_size, block_size):
    k1, k2, k3, k4 = jax.random.split(key, 4)
    # nn.Embedding default init ~ N(0, 1)
    tok_emb = jax.random.normal(k1, (vocab_size, embedding_size), jnp.float32)
    pos_emb = jax.random.normal(k2, (block_size, embedding_size), jnp.float32)
    # nn.Linear default init ~ U(-1/sqrt(fan_in), 1/sqrt(fan_in)); weight stored
    # transposed as (E, V) so the kernel does x @ W_t directly.
    bound = 1.0 / (embedding_size ** 0.5)
    w = jax.random.uniform(k3, (embedding_size, vocab_size), jnp.float32,
                           minval=-bound, maxval=bound)
    b = jax.random.uniform(k4, (1, vocab_size), jnp.float32,
                           minval=-bound, maxval=bound)
    return {"tok_emb": tok_emb, "pos_emb": pos_emb, "w": w, "b": b}


def _tile_rows(n_rows, c, target=512):
    """Row-tile size: multiple of C (pos pattern) and of 8 (sublanes)."""
    base = (c * 8) // math.gcd(c, 8)          # lcm(C, 8)
    tm = (min(target, n_rows) // base) * base
    return max(base, tm)


def bigram_forward(idx, params, targets=None):
    B, T, C = idx.shape
    tab = params["tok_emb"]                   # (vocab, E) f32
    E = tab.shape[1]
    V = params["w"].shape[1]
    block_size = params["pos_emb"].shape[0]

    # Mirror the torch broadcast (B,T,C,E) + (T,E): pos aligns with the C axis.
    if C != T:
        raise ValueError(
            f"idx last dim C={C} must equal T={T} for the module's pos_emb "
            "broadcast to be well-defined")
    if T > block_size:
        raise ValueError(f"T={T} exceeds block_size={block_size}")

    pos = params["pos_emb"][:T]               # (C, E) f32 — NOT broadcast to N

    # Lane-dense lm_head: pad V to a multiple of 128 (zero columns).
    V_pad = max(128, pl.cdiv(V, 128) * 128)
    w_pad = jnp.zeros((E, V_pad), jnp.bfloat16).at[:, :V].set(
        params["w"].astype(jnp.bfloat16))
    b_pad = jnp.zeros((1, V_pad), jnp.float32).at[:, :V].set(
        params["b"].reshape(1, V))

    N = B * T * C
    idx2d = idx.reshape(N, 1).astype(jnp.int32)

    vocab = tab.shape[0]
    TM = _tile_rows(N, C)
    grid = (pl.cdiv(N, TM),)

    logits_pad = pl.pallas_call(
        _bigram_head_kernel,
        out_shape=jax.ShapeDtypeStruct((N, V_pad), jnp.float32),
        grid_spec=pltpu.PrefetchScalarGridSpec(
            num_scalar_prefetch=0,
            grid=grid,
            in_specs=[
                pl.BlockSpec((TM, 1), lambda i: (i, 0)),       # token indices
                pl.BlockSpec((vocab, E), lambda i: (0, 0)),    # tok_emb table
                pl.BlockSpec((C, E), lambda i: (0, 0)),        # pos_emb table
                pl.BlockSpec((E, V_pad), lambda i: (0, 0)),    # lm_head W (bf16)
                pl.BlockSpec((1, V_pad), lambda i: (0, 0)),    # lm_head b
            ],
            out_specs=pl.BlockSpec((TM, V_pad), lambda i: (i, 0)),
        ),
        compiler_params=pltpu.CompilerParams(
            dimension_semantics=("parallel",),        # rows independent: v7x 2-TC
            vmem_limit_bytes=32 * 1024 * 1024,        # safe on v5e/v6e/v7x
        ),
    )(idx2d, tab, pos, w_pad, b_pad)

    logits = logits_pad[:, :V].reshape(B, T, C, V)
    loss = None
    # TODO(synk): the PyTorch `targets is not None` branch unpacks 4-D logits
    # into 3 names and would raise in torch itself; only targets=None is
    # well-defined, so the loss path is not implemented.
    return logits, loss


if __name__ == "__main__":
    vocab_size, embedding_size, block_size = 32, 16, 8
    B, T, C = 2, 8, 8  # C must equal T for the module's broadcast to be valid

    key = jax.random.PRNGKey(0)
    kp, ki = jax.random.split(key)
    params = init_params(kp, vocab_size, embedding_size, block_size)
    idx = jax.random.randint(ki, (B, T, C), 0, vocab_size, dtype=jnp.int32)

    logits, loss = bigram_forward(idx, params)
    logits = jax.block_until_ready(logits)

    # Pure-JAX f32 reference of the same semantics.
    tok = jnp.take(params["tok_emb"], idx, axis=0)
    x_ref = tok + params["pos_emb"][:T]
    ref = jnp.einsum("btce,ev->btcv", x_ref, params["w"]) + params["b"][0]

    assert logits.shape == (B, T, C, vocab_size)
    assert loss is None
    # bf16 matmul operands (f32 accumulate) -> loosened tolerance vs f32 ref.
    assert jnp.allclose(logits, ref, atol=5e-2, rtol=5e-2), float(
        jnp.max(jnp.abs(logits - ref)))

    print("KERNEL_OK")
</pallas_src>

<mosaic_0001>
module attributes {stable_mosaic.version = 11 : i64} {
  func.func @_bigram_head_kernel(%arg0: i32, %arg1: memref<128x1xi32, #tpu.memory_space<vmem>>, %arg2: memref<32x16xf32, #tpu.memory_space<vmem>>, %arg3: memref<8x16xf32, #tpu.memory_space<vmem>>, %arg4: memref<16x128xbf16, #tpu.memory_space<vmem>>, %arg5: memref<1x128xf32, #tpu.memory_space<vmem>>, %arg6: memref<128x128xf32, #tpu.memory_space<vmem>>) attributes {dimension_semantics = [#tpu.dimension_semantics<parallel>], iteration_bounds = array<i64: 1>, scalar_prefetch = 0 : i64, scratch_operands = 0 : i64, tpu.core_type = #tpu.core_type<tc>, window_params = [{transform_indices = @transform_0, window_bounds = array<i64: 128, 1>}, {pipeline_mode = #tpu.pipeline_mode<synchronous>, transform_indices = @transform_1, window_bounds = array<i64: 32, 16>}, {pipeline_mode = #tpu.pipeline_mode<synchronous>, transform_indices = @transform_2, window_bounds = array<i64: 8, 16>}, {pipeline_mode = #tpu.pipeline_mode<synchronous>, transform_indices = @transform_3, window_bounds = array<i64: 16, 128>}, {pipeline_mode = #tpu.pipeline_mode<synchronous>, transform_indices = @transform_4, window_bounds = array<i64: 1, 128>}, {transform_indices = @transform_5, window_bounds = array<i64: 128, 128>}]} {
    %c0 = arith.constant 0 : index
    %c0_0 = arith.constant 0 : index
    %0 = vector.load %arg1[%c0, %c0_0] : memref<128x1xi32, #tpu.memory_space<vmem>>, vector<128x1xi32>
    %1 = tpu.iota {dimensions = array<i32: 1>} : vector<128x32xi32>
    %2 = vector.broadcast %0 : vector<128x1xi32> to vector<128x32xi32>
    %3 = arith.cmpi eq, %2, %1 : vector<128x32xi32>
    %4 = arith.extui %3 : vector<128x32xi1> to vector<128x32xi32>
    %5 = arith.sitofp %4 : vector<128x32xi32> to vector<128x32xf32>
    %c0_1 = arith.constant 0 : index
    %c0_2 = arith.constant 0 : index
    %6 = vector.load %arg2[%c0_1, %c0_2] : memref<32x16xf32, #tpu.memory_space<vmem>>, vector<32x16xf32>
    %cst = arith.constant dense<0.000000e+00> : vector<128x16xf32>
    %7 = tpu.matmul %5, %6, %cst {dimension_numbers = #tpu.dot_dimension_numbers<[1], [0], [0], [1], [0, 0, 1, 1], [], []>} : vector<128x32xf32>, vector<32x16xf32>, vector<128x16xf32> -> vector<128x16xf32>
    %8 = tpu.iota {dimensions = array<i32: 0>} : vector<128x8xi32>
    %c8_i32 = arith.constant 8 : i32
    %c0_i32 = arith.constant 0 : i32
    %9 = arith.cmpi eq, %c8_i32, %c0_i32 : i32
    %c1_i32 = arith.constant 1 : i32
    %10 = arith.select %9, %c1_i32, %c8_i32 : i32
    %11 = vector.broadcast %10 : i32 to vector<128x8xi32>
    %12 = arith.remsi %8, %11 : vector<128x8xi32>
    %c0_i32_3 = arith.constant 0 : i32
    %13 = vector.broadcast %c0_i32_3 : i32 to vector<128x8xi32>
    %14 = arith.cmpi ne, %12, %13 : vector<128x8xi32>
    %c0_i32_4 = arith.constant 0 : i32
    %15 = vector.broadcast %c0_i32_4 : i32 to vector<128x8xi32>
    %16 = arith.cmpi slt, %12, %15 : vector<128x8xi32>
    %c0_i32_5 = arith.constant 0 : i32
    %17 = arith.cmpi slt, %10, %c0_i32_5 : i32
    %18 = vector.broadcast %17 : i1 to vector<128x8xi1>
    %19 = vector.broadcast %18 : vector<128x8xi1> to vector<128x8xi1>
    %20 = arith.xori %16, %19 : vector<128x8xi1>
    %21 = arith.andi %20, %14 : vector<128x8xi1>
    %22 = vector.broadcast %10 : i32 to vector<128x8xi32>
    %23 = arith.addi %12, %22 : vector<128x8xi32>
    %24 = arith.select %21, %23, %12 : vector<128x8xi1>, vector<128x8xi32>
    %25 = tpu.iota {dimensions = array<i32: 1>} : vector<128x8xi32>
    %26 = arith.cmpi eq, %24, %25 : vector<128x8xi32>
    %27 = arith.extui %26 : vector<128x8xi1> to vector<128x8xi32>
    %28 = arith.sitofp %27 : vector<128x8xi32> to vector<128x8xf32>
    %c0_6 = arith.constant 0 : index
    %c0_7 = arith.constant 0 : index
    %29 = vector.load %arg3[%c0_6, %c0_7] : memref<8x16xf32, #tpu.memory_space<vmem>>, vector<8x16xf32>
    %cst_8 = arith.constant dense<0.000000e+00> : vector<128x16xf32>
    %30 = tpu.matmul %28, %29, %cst_8 {dimension_numbers = #tpu.dot_dimension_numbers<[1], [0], [0], [1], [0, 0, 1, 1], [], []>} : vector<128x8xf32>, vector<8x16xf32>, vector<128x16xf32> -> vector<128x16xf32>
    %31 = arith.addf %7, %30 : vector<128x16xf32>
    %32 = arith.truncf %31 : vector<128x16xf32> to vector<128x16xbf16>
    %c0_9 = arith.constant 0 : index
    %c0_10 = arith.constant 0 : index
    %33 = vector.load %arg4[%c0_9, %c0_10] : memref<16x128xbf16, #tpu.memory_space<vmem>>, vector<16x128xbf16>
    %cst_11 = arith.constant dense<0.000000e+00> : vector<128x128xf32>
    %34 = tpu.matmul %32, %33, %cst_11 {dimension_numbers = #tpu.dot_dimension_numbers<[1], [0], [0], [1], [0, 0, 1, 1], [], []>} : vector<128x16xbf16>, vector<16x128xbf16>, vector<128x128xf32> -> vector<128x128xf32>
    %c0_12 = arith.constant 0 : index
    %c0_13 = arith.constant 0 : index
    %35 = vector.load %arg5[%c0_12, %c0_13] : memref<1x128xf32, #tpu.memory_space<vmem>>, vector<1x128xf32>
    %36 = vector.broadcast %35 : vector<1x128xf32> to vector<128x128xf32>
    %37 = arith.addf %34, %36 : vector<128x128xf32>
    %c0_14 = arith.constant 0 : index
    %c0_15 = arith.constant 0 : index
    %38 = vector.load %arg6[%c0_14, %c0_15] : memref<128x128xf32, #tpu.memory_space<vmem>>, vector<128x128xf32>
    tpu.vector_store %arg6[%c0_14, %c0_15], %37 {strides = array<i32>} : memref<128x128xf32, #tpu.memory_space<vmem>>, vector<128x128xf32>,
    return
  }
  func.func @transform_0(%arg0: i32) -> (i32, i32) {
    %c0_i32 = arith.constant 0 : i32
    %c0_i32_0 = arith.constant 0 : i32
    return %arg0, %c0_i32 : i32, i32
  }
  func.func @transform_1(%arg0: i32) -> (i32, i32) {
    %c0_i32 = arith.constant 0 : i32
    %c0_i32_0 = arith.constant 0 : i32
    %c0_i32_1 = arith.constant 0 : i32
    return %c0_i32, %c0_i32_0 : i32, i32
  }
  func.func @transform_2(%arg0: i32) -> (i32, i32) {
    %c0_i32 = arith.constant 0 : i32
    %c0_i32_0 = arith.constant 0 : i32
    %c0_i32_1 = arith.constant 0 : i32
    return %c0_i32, %c0_i32_0 : i32, i32
  }
  func.func @transform_3(%arg0: i32) -> (i32, i32) {
    %c0_i32 = arith.constant 0 : i32
    %c0_i32_0 = arith.constant 0 : i32
    %c0_i32_1 = arith.constant 0 : i32
    return %c0_i32, %c0_i32_0 : i32, i32
  }
  func.func @transform_4(%arg0: i32) -> (i32, i32) {
    %c0_i32 = arith.constant 0 : i32
    %c0_i32_0 = arith.constant 0 : i32
    %c0_i32_1 = arith.constant 0 : i32
    return %c0_i32, %c0_i32_0 : i32, i32
  }
  func.func @transform_5(%arg0: i32) -> (i32, i32) {
    %c0_i32 = arith.constant 0 : i32
    %c0_i32_0 = arith.constant 0 : i32
    return %arg0, %c0_i32 : i32, i32
  }
}

</mosaic_0001>

<bundles_post_ra>
// kernel: tpu_custom_call.1
= control target key start
LH: loop header
LB: loop body
LE: loop exit
PB: predicated region body
PF: predicated region fallthrough
CT: control target
= control target key end

     0   :  { %v38_v2 = vlaneseq  ;;  %v1217_v3 = vmov 0   ;;  %vm398_vm0 = vcmask 64512   ;;  %v1218_v24 = vmov 0.0   ;;  %s1457_s0 = inlined_call_operand.vmem [shape: s32[128,1], index: 0, kind: input, shape index: {}]   ;;  %s1458_s1 = inlined_call_operand.vmem [shape: f32[32,16], index: 1, kind: input, shape index: {}]   ;;  %s1459_s2 = inlined_call_operand.vmem [shape: f32[8,16], index: 2, kind: input, shape index: {}]   ;;  %s1460_s3 = inlined_call_operand.vmem [shape: bf16[16,128], index: 3, kind: input, shape index: {}]   ;;  %s1461_s4 = inlined_call_operand.vmem [shape: f32[1,128], index: 4, kind: input, shape index: {}]   ;;  %s1462_s5 = inlined_call_operand.hbm [shape: f32[128,128], index: 5, kind: output, shape index: {}]  }
   0x1   :  { %v24_v0 = vld [vmem:[%s1457_s0 + $0x10] sm:$0xff]  ;;  %v22_v1 = vld [vmem:[%s1457_s0] sm:$0xff]  ;;  %1191 = vset.pattern.permute.xlu1 %v1217_v3  ;;  %1190 = vset.pattern.permute.xlu0 %v1217_v3  ;;  %v25_v6 = vld [vmem:[%s1457_s0 + $0x18] sm:$0xff] }
   0x2   :  { %47 = vperm.xlu1 %1191, %v24_v0   ;;  %41 = vperm.xlu0 %1190, %v22_v1   ;;  %v1258_v4 = vand.u32 127, %v38_v2  ;;  %v1260_v5 = vshrl.u32 %v38_v2, 7  ;;  %v23_v7 = vld [vmem:[%s1457_s0 + $0x8] sm:$0xff]  ;;  %v397_v12 = vld [vmem:[%s1459_s2] sm:$0xff]  ;;  %v138_v20 = vld [vmem:[%s1458_s1 + $0x10] sm:$0xff] }
   0x3   :  { %v27_v11 = vld [vmem:[%s1457_s0 + $0x28] sm:$0xff]  ;;  %v136_v13 = vld [vmem:[%s1458_s1] sm:$0xff]  ;;  %v139_v21 = vld [vmem:[%s1458_s1 + $0x18] sm:$0xff]  ;;  %1083 = vmatprep.subr.mxu0 %v397_v12  ;;  %1167 = vmatprep.subr.mxu1 %v397_v12 }
   0x4   :  { %v161_v8 = vand.u32 7, %v1260_v5  ;;  %v142_v9 = vadd.s32 8, %v1260_v5  ;;  %v143_v10 = vadd.s32 16, %v1260_v5  ;;  %v144_v14 = vadd.s32 24, %v1260_v5  ;;  %v137_v18 = vld [vmem:[%s1458_s1 + $0x8] sm:$0xff]  ;;  %v26_v23 = vld [vmem:[%s1457_s0 + $0x20] sm:$0xff]  ;;  %1084 = vmatpush3.msra.mxu0 %v397_v12 }
   0x5   :  { %v145_v15 = vadd.s32 32, %v1260_v5  ;;  %v146_v16 = vadd.s32 40, %v1260_v5  ;;  %v147_v22 = vadd.s32 48, %v1260_v5  ;;  %v1159_v26 = vpack.c.bf16 %v137_v18, %v136_v13 }
   0x6   :  { %50 = vperm.xlu1 %1191, %v25_v6   ;;  %44 = vperm.xlu0 %1190, %v23_v7   ;;  %vm349_vm1 = vcmp.eq.s32.totalorder %v161_v8, %v1258_v4  ;;  %v168_v17 = vand.u32 7, %v142_v9  ;;  %v175_v19 = vand.u32 7, %v143_v10  ;;  %v182_v27 = vand.u32 7, %v144_v14 }
   0x7   :  { %v979_v25 = vsel %vm349_vm1, 1.0, %v1218_v24  ;;  %v189_v28 = vand.u32 7, %v145_v15  ;;  %v196_v29 = vand.u32 7, %v146_v16 }
   0x8   :  { %1085 = vmatprep.mubr.msk.f32.mxu0 %vm398_vm0, %v979_v25  ;;  %vm350_vm2 = vcmp.eq.s32.totalorder %v168_v17, %v1258_v4  ;;  %vm351_vm3 = vcmp.eq.s32.totalorder %v175_v19, %v1258_v4 }
   0x9   :  { %10 = vsyncpa [#allocation3], 0  ;;  %v980_v30 = vsel %vm350_vm2, 1.0, %v1218_v24  ;;  %1160 = vmatprep.subr.bf16.mxu0 %v1159_v26  ;;  %v981_v31 = vsel %vm351_vm3, 1.0, %v1218_v24  ;;  %vm352_vm4 = vcmp.eq.s32.totalorder %v182_v27, %v1258_v4  ;;  %v1163_v32 = vpack.c.bf16 %v139_v21, %v138_v20  ;;  %1168 = vmatpush3.msra.mxu1 %v397_v12  ;;  %v29_v34 = vld [vmem:[%s1457_s0 + $0x38] sm:$0xff]  ;;  %v28_v35 = vld [vmem:[%s1457_s0 + $0x30] sm:$0xff] }
   0xa   :  { %56 = vperm.xlu1 %1191, %v27_v11   ;;  %53 = vperm.xlu0 %1190, %v26_v23   ;;  %vm353_vm5 = vcmp.eq.s32.totalorder %v189_v28, %v1258_v4  ;;  %v203_v33 = vand.u32 7, %v147_v22  ;;  %v148_v36 = vadd.s32 56, %v1260_v5  ;;  %v982_v37 = vsel %vm352_vm4, 1.0, %v1218_v24  ;;  %v31_v40 = vld [vmem:[%s1457_s0 + $0x48] sm:$0xff]  ;;  %v30_v41 = vld [vmem:[%s1457_s0 + $0x40] sm:$0xff]  ;;  %v33_v47 = vld [vmem:[%s1457_s0 + $0x58] sm:$0xff] }
   0xb   :  { %1086 = vmatmul.mubr.msk.f32.vlgmr.msra.gmra.mrb[0].mxu0 %vm398_vm0, %v980_v30  ;;  %v983_v38 = vsel %vm353_vm5, 1.0, %v1218_v24  ;;  %vm354_vm6 = vcmp.eq.s32.totalorder %v196_v29, %v1258_v4  ;;  %v149_v43 = vadd.s32 64, %v1260_v5  ;;  %v150_v45 = vadd.s32 72, %v1260_v5  ;;  %v32_v48 = vld [vmem:[%s1457_s0 + $0x50] sm:$0xff]  ;;  %v35_v56 = vld [vmem:[%s1457_s0 + $0x68] sm:$0xff]  ;;  %v34_v57 = vld [vmem:[%s1457_s0 + $0x60] sm:$0xff] }
   0xc   :  { %1162 = vmatpush3.bf16.msra.mxu0 %v1159_v26  ;;  %1088 = vmatprep.mubr.msk.f32.mxu0 %vm398_vm0, %v981_v31  ;;  %v210_v39 = vand.u32 7, %v148_v36  ;;  %vm355_vm7 = vcmp.eq.s32.totalorder %v203_v33, %v1258_v4  ;;  %v984_v42 = vsel %vm354_vm6, 1.0, %v1218_v24  ;;  %v151_v51 = vadd.s32 80, %v1260_v5  ;;  %v37_v0 = vld [vmem:[%s1457_s0 + $0x78] sm:$0xff]  ;;  %v36_v1 = vld [vmem:[%s1457_s0 + $0x70] sm:$0xff]  ;;  %v1192_v12 = vld [vmem:[%s1460_s3] sm:$0xff]  }
   0xd   :  { %1164 = vmatprep.subr.bf16.mxu0 %v1163_v32  ;;  %v985_v44 = vsel %vm355_vm7, 1.0, %v1218_v24  ;;  %v217_v46 = vand.u32 7, %v149_v43  ;;  %v224_v49 = vand.u32 7, %v150_v45  ;;  %v152_v53 = vadd.s32 88, %v1260_v5  ;;  %1141 = vmatprep.subr.bf16.mxu1 %v1192_v12 }
   0xe   :  { %62 = vperm.xlu1 %1191, %v29_v34   ;;  %59 = vperm.xlu0 %1190, %v28_v35   ;;  %vm356_vm8 = vcmp.eq.s32.totalorder %v210_v39, %v1258_v4  ;;  %v231_v55 = vand.u32 7, %v151_v51  ;;  %v153_v59 = vadd.s32 96, %v1260_v5  ;;  %v154_v61 = vadd.s32 104, %v1260_v5 }
   0xf   :  { %1089 = vmatmul.mubr.msk.f32.gmra.mrb[2].mxu0 %vm398_vm0, %v982_v37  ;;  %v986_v50 = vsel %vm356_vm8, 1.0, %v1218_v24  ;;  %vm357_vm9 = vcmp.eq.s32.totalorder %v217_v46, %v1258_v4  ;;  %vm358_vm10 = vcmp.eq.s32.totalorder %v224_v49, %v1258_v4  ;;  %v238_v58 = vand.u32 7, %v152_v53 }
  0x10   :  { %1091 = vmatprep.mubr.msk.f32.mxu0 %vm398_vm0, %v983_v38  ;;  %1166 = vmatpush3.bf16.msra.mxu0 %v1163_v32  ;;  %v987_v52 = vsel %vm357_vm9, 1.0, %v1218_v24  ;;  %v988_v54 = vsel %vm358_vm10, 1.0, %v1218_v24  ;;  %vm359_vm11 = vcmp.eq.s32.totalorder %v231_v55, %v1258_v4  ;;  %v245_v63 = vand.u32 7, %v153_v59 }
  0x11   :  { %1097 = vmatprep.mubr.msk.f32.mxu1 %vm398_vm0, %v987_v52  ;;  %v989_v60 = vsel %vm359_vm11, 1.0, %v1218_v24  ;;  %vm360_vm12 = vcmp.eq.s32.totalorder %v238_v58, %v1258_v4  ;;  %v252_v2 = vand.u32 7, %v154_v61  ;;  %v155_v3 = vadd.s32 112, %v1260_v5 }
  0x12   :  { %68 = vperm.xlu1 %1191, %v31_v40   ;;  %65 = vperm.xlu0 %1190, %v30_v41   ;;  %v990_v62 = vsel %vm360_vm12, 1.0, %v1218_v24  ;;  %vm361_vm13 = vcmp.eq.s32.totalorder %v245_v63, %v1258_v4  ;;  %v156_v7 = vadd.s32 120, %v1260_v5  ;;  %vm592_vm2 = vcmask 261120  }
  0x13   :  { %1092 = vmatmul.mubr.msk.f32.gmra.mrb[4].mxu0 %vm398_vm0, %v984_v42  ;;  %1098 = vmatmul.mubr.msk.f32.vlgmr.msra.gmra.mrb[0].mxu1 %vm398_vm0, %v988_v54  ;;  %v991_v6 = vsel %vm361_vm13, 1.0, %v1218_v24  ;;  %vm362_vm14 = vcmp.eq.s32.totalorder %v252_v2, %v1258_v4  ;;  %v259_v9 = vand.u32 7, %v155_v3 }
  0x14   :  { %1094 = vmatprep.mubr.msk.f32.mxu0 %vm398_vm0, %v985_v44  ;;  %1100 = vmatprep.mubr.msk.f32.mxu1 %vm398_vm0, %v989_v60  ;;  %v992_v8 = vsel %vm362_vm14, 1.0, %v1218_v24  ;;  %v266_v10 = vand.u32 7, %v156_v7 }
  0x15   :  { %vm363_vm15 = vcmp.eq.s32.totalorder %v259_v9, %v1258_v4  ;;  %1142 = vmatpush3.bf16.msra.mxu1 %v1192_v12 }
  0x16   :  { %74 = vperm.xlu1 %1191, %v33_v47   ;;  %71 = vperm.xlu0 %1190, %v32_v48   ;;  %v993_v11 = vsel %vm363_vm15, 1.0, %v1218_v24  ;;  %vm364_vm1 = vcmp.eq.s32.totalorder %v266_v10, %v1258_v4 }
  0x17   :  { %1095 = vmatmul.mubr.msk.f32.gmra.mrb[6].mxu0 %vm398_vm0, %v986_v50  ;;  %1101 = vmatmul.mubr.msk.f32.gmra.mrb[2].mxu1 %vm398_vm0, %v990_v62  ;;  %v994_v5 = vsel %vm364_vm1, 1.0, %v1218_v24 }
  0x18   :  { %1103 = vmatprep.mubr.msk.f32.mxu1 %vm398_vm0, %v991_v6 }
  0x1a   :  { %80 = vperm.xlu1 %1191, %v35_v56   ;;  %77 = vperm.xlu0 %1190, %v34_v57  }
  0x1b   :  { %1104 = vmatmul.mubr.msk.f32.gmra.mrb[4].mxu1 %vm398_vm0, %v992_v8 }
  0x1c   :  { %1106 = vmatprep.mubr.msk.f32.mxu1 %vm398_vm0, %v993_v11 }
  0x1e   :  { %86 = vperm.xlu1 %1191, %v37_v0   ;;  %83 = vperm.xlu0 %1190, %v36_v1  }
  0x1f   :  { %1107 = vmatmul.mubr.msk.f32.gmra.mrb[6].mxu1 %vm398_vm0, %v994_v5 }
  0x81   :  { %v48_v13 = vpop.permute.xlu1 %47  ;;  %v42_v14 = vpop.permute.xlu0 %41 }
  0x82   :  { %vm88_vm3 = vcmp.eq.s32.totalorder %v42_v14, %v1258_v4  ;;  %vm90_vm4 = vcmp.eq.s32.totalorder %v48_v13, %v1258_v4 }
  0x83   :  { %v963_v15 = vsel %vm88_vm3, 1.0, %v1218_v24  ;;  %v965_v18 = vsel %vm90_vm4, 1.0, %v1218_v24  ;;  %vm809_vm4 = vcmask 130048  }
  0x84   :  { %1117 = vmatprep.mubr.msk.f32.mxu0 %vm592_vm2, %v963_v15 }
  0x85   :  { %v51_v16 = vpop.permute.xlu1 %50  ;;  %v45_v17 = vpop.permute.xlu0 %44 }
  0x86   :  { %vm89_vm0 = vcmp.eq.s32.totalorder %v45_v17, %v1258_v4  ;;  %vm91_vm5 = vcmp.eq.s32.totalorder %v51_v16, %v1258_v4 }
  0x87   :  { %v964_v19 = vsel %vm89_vm0, 1.0, %v1218_v24  ;;  %v966_v22 = vsel %vm91_vm5, 1.0, %v1218_v24 }
  0x88   :  { %1118 = vmatmul.mubr.msk.f32.vlgmr.msra.gmra.mrb[0].mxu0 %vm592_vm2, %v964_v19 }
  0x89   :  { %v57_v20 = vpop.permute.xlu1 %56  ;;  %1120 = vmatprep.mubr.msk.f32.mxu0 %vm592_vm2, %v965_v18  ;;  %v54_v21 = vpop.permute.xlu0 %53 }
  0x8a   :  { %vm92_vm6 = vcmp.eq.s32.totalorder %v54_v21, %v1258_v4  ;;  %vm93_vm7 = vcmp.eq.s32.totalorder %v57_v20, %v1258_v4  ;;  %v1027_v21 = vld [vmem:[%s1461_s4] ss:$0 sm:$0xff]  ;;  %s1219_s4 = smov [#allocation2]  }
  0x8b   :  { %v967_v23 = vsel %vm92_vm6, 1.0, %v1218_v24  ;;  %v968_v27 = vsel %vm93_vm7, 1.0, %v1218_v24  ;;  %s952_s9 = sshll.u32 %s1219_s4, 4  ;;  %s953_s9 = int_to_ptr.vmem [resolvable:$true] %s952_s9 }
  0x8c   :  { %1121 = vmatmul.mubr.msk.f32.gmra.mrb[2].mxu0 %vm592_vm2, %v966_v22  ;;  %s1193_s10 = scalar_lea.vmem %s953_s9, 2048  ;;  %p1198_p1 = scmp.lt.s32.totalorder %s953_s9, %s953_s9 }
  0x8d   :  { %v63_v25 = vpop.permute.xlu1 %62  ;;  %1123 = vmatprep.mubr.msk.f32.mxu0 %vm592_vm2, %v967_v23  ;;  %v60_v26 = vpop.permute.xlu0 %59  ;;  %p1194_p0 = scmp.ne.s32.totalorder %s953_s9, %s1193_s10  ;;  %p1199_p2 = scmp.lt.s32.totalorder %s1193_s10, %s1193_s10 }
  0x8e   :  { %vm94_vm8 = vcmp.eq.s32.totalorder %v60_v26, %v1258_v4  ;;  %vm95_vm9 = vcmp.eq.s32.totalorder %v63_v25, %v1258_v4 }
  0x8f   :  { %v969_v28 = vsel %vm94_vm8, 1.0, %v1218_v24  ;;  %v970_v31 = vsel %vm95_vm9, 1.0, %v1218_v24  ;;  %p1200_p3 = por %p1199_p2, %p1198_p1 }
  0x90   :  { %1124 = vmatmul.mubr.msk.f32.gmra.mrb[4].mxu0 %vm592_vm2, %v968_v27 }
  0x91   :  { %v69_v29 = vpop.permute.xlu1 %68  ;;  %1126 = vmatprep.mubr.msk.f32.mxu0 %vm592_vm2, %v969_v28  ;;  %v66_v30 = vpop.permute.xlu0 %65  ;;  %p1201_p4 = pnand %p1200_p3, %p1194_p0 }
  0x92   :  { %vm96_vm10 = vcmp.eq.s32.totalorder %v66_v30, %v1258_v4  ;;  %vm97_vm11 = vcmp.eq.s32.totalorder %v69_v29, %v1258_v4 }
  0x93   :  { %v971_v32 = vsel %vm96_vm10, 1.0, %v1218_v24  ;;  %v972_v35 = vsel %vm97_vm11, 1.0, %v1218_v24 }
  0x94   :  { %1127 = vmatmul.mubr.msk.f32.gmra.mrb[6].mxu0 %vm592_vm2, %v970_v31 }
  0x95   :  { %v75_v33 = vpop.permute.xlu1 %74  ;;  %1129 = vmatprep.mubr.msk.f32.mxu0 %vm592_vm2, %v971_v32  ;;  %v72_v34 = vpop.permute.xlu0 %71 }
  0x96   :  { %vm98_vm12 = vcmp.eq.s32.totalorder %v72_v34, %v1258_v4  ;;  %vm99_vm13 = vcmp.eq.s32.totalorder %v75_v33, %v1258_v4 }
  0x97   :  { %v973_v36 = vsel %vm98_vm12, 1.0, %v1218_v24  ;;  %v974_v39 = vsel %vm99_vm13, 1.0, %v1218_v24 }
  0x98   :  { %1130 = vmatmul.mubr.msk.f32.gmra.mrb[8].mxu0 %vm592_vm2, %v972_v35 }
  0x99   :  { %v81_v37 = vpop.permute.xlu1 %80  ;;  %1132 = vmatprep.mubr.msk.f32.mxu0 %vm592_vm2, %v973_v36  ;;  %v78_v38 = vpop.permute.xlu0 %77 }
  0x9a   :  { %vm100_vm14 = vcmp.eq.s32.totalorder %v78_v38, %v1258_v4  ;;  %vm101_vm15 = vcmp.eq.s32.totalorder %v81_v37, %v1258_v4 }
  0x9b   :  { %v975_v40 = vsel %vm100_vm14, 1.0, %v1218_v24  ;;  %v976_v43 = vsel %vm101_vm15, 1.0, %v1218_v24 }
  0x9c   :  { %1133 = vmatmul.mubr.msk.f32.gmra.mrb[10].mxu0 %vm592_vm2, %v974_v39 }
  0x9d   :  { %v87_v41 = vpop.permute.xlu1 %86  ;;  %1135 = vmatprep.mubr.msk.f32.mxu0 %vm592_vm2, %v975_v40  ;;  %v84_v42 = vpop.permute.xlu0 %83 }
  0x9e   :  { %vm102_vm1 = vcmp.eq.s32.totalorder %v84_v42, %v1258_v4  ;;  %vm103_vm3 = vcmp.eq.s32.totalorder %v87_v41, %v1258_v4 }
  0x9f   :  { %v977_v44 = vsel %vm102_vm1, 1.0, %v1218_v24  ;;  %v978_v45 = vsel %vm103_vm3, 1.0, %v1218_v24 }
  0xa0   :  { %1136 = vmatmul.mubr.msk.f32.gmra.mrb[12].mxu0 %vm592_vm2, %v976_v43 }
  0xa1   :  { %1138 = vmatprep.mubr.msk.f32.mxu0 %vm592_vm2, %v977_v44 }
  0xa4   :  { %1139 = vmatmul.mubr.msk.f32.gmra.mrb[14].mxu0 %vm592_vm2, %v978_v45 }
  0xe6   :  { %v1099_v46 = vpop.f32.mrb[0].mxu1 }
  0xe7   :  { %v553_v47 = vpop.f32.mrb[1].mxu1 }
  0xea   :  { %v1102_v48 = vpop.f32.mrb[2].mxu1 }
  0xeb   :  { %v563_v49 = vpop.f32.mrb[3].mxu1 }
  0xee   :  { %v1105_v50 = vpop.f32.mrb[4].mxu1 }
  0xef   :  { %v573_v51 = vpop.f32.mrb[5].mxu1 }
  0xf2   :  { %v1108_v52 = vpop.f32.mrb[6].mxu1 }
  0xf3   :  { %v583_v53 = vpop.f32.mrb[7].mxu1 }
 0x15b   :  { %v1119_v54 = vpop.f32.mrb[0].mxu0 }
 0x15c   :  { %v707_v55 = vpop.f32.mrb[1].mxu0 }
 0x15d   :  { %v786_v4 = vpack.c.bf16 %v1119_v54, %v707_v55 }
 0x15f   :  { %v1122_v56 = vpop.f32.mrb[2].mxu0  ;;  %1143 = vmatprep.mubr.msk.bf16.mxu1 %vm809_vm4, %v786_v4 }
 0x160   :  { %v717_v57 = vpop.f32.mrb[3].mxu0 }
 0x161   :  { %v787_v58 = vpack.c.bf16 %v1122_v56, %v717_v57 }
 0x163   :  { %v1125_v24 = vpop.f32.mrb[4].mxu0  ;;  %1144 = vmatmul.mubr.msk.bf16.vlgmr.msra.gmra.mrb[8].mxu1 %vm809_vm4, %v787_v58 }
 0x164   :  { %v727_v59 = vpop.f32.mrb[5].mxu0 }
 0x165   :  { %v788_v60 = vpack.c.bf16 %v1125_v24, %v727_v59 }
 0x167   :  { %v1128_v61 = vpop.f32.mrb[6].mxu0  ;;  %1147 = vmatprep.mubr.msk.bf16.mxu1 %vm809_vm4, %v788_v60 }
 0x168   :  { %v737_v62 = vpop.f32.mrb[7].mxu0 }
 0x169   :  { %v789_v63 = vpack.c.bf16 %v1128_v61, %v737_v62 }
 0x16b   :  { %v1131_v0 = vpop.f32.mrb[8].mxu0  ;;  %1148 = vmatmul.mubr.msk.bf16.gmra.mrb[12].mxu1 %vm809_vm4, %v789_v63 }
 0x16c   :  { %v753_v1 = vadd.f32 %v1131_v0, %v1099_v46  ;;  %v747_v2 = vpop.f32.mrb[9].mxu0 }
 0x16d   :  { %v748_v3 = vadd.f32 %v747_v2, %v553_v47 }
 0x16f   :  { %v790_v6 = vpack.c.bf16 %v753_v1, %v748_v3  ;;  %v1134_v7 = vpop.f32.mrb[10].mxu0 }
 0x170   :  { %v763_v8 = vadd.f32 %v1134_v7, %v1102_v48  ;;  %v757_v9 = vpop.f32.mrb[11].mxu0 }
 0x171   :  { %v758_v10 = vadd.f32 %v757_v9, %v563_v49  ;;  %1151 = vmatprep.mubr.msk.bf16.mxu1 %vm809_vm4, %v790_v6 }
 0x173   :  { %v791_v11 = vpack.c.bf16 %v763_v8, %v758_v10  ;;  %v1137_v5 = vpop.f32.mrb[12].mxu0 }
 0x174   :  { %v773_v12 = vadd.f32 %v1137_v5, %v1105_v50  ;;  %v767_v13 = vpop.f32.mrb[13].mxu0 }
 0x175   :  { %v768_v14 = vadd.f32 %v767_v13, %v573_v51  ;;  %1152 = vmatmul.mubr.msk.bf16.gmra.mrb[16].mxu1 %vm809_vm4, %v791_v11 }
 0x177   :  { %v792_v15 = vpack.c.bf16 %v773_v12, %v768_v14  ;;  %v1140_v16 = vpop.f32.mrb[14].mxu0 }
 0x178   :  { %v783_v17 = vadd.f32 %v1140_v16, %v1108_v52  ;;  %v777_v18 = vpop.f32.mrb[15].mxu0 }
 0x179   :  { %v778_v19 = vadd.f32 %v777_v18, %v583_v53  ;;  %1155 = vmatprep.mubr.msk.bf16.mxu1 %vm809_vm4, %v792_v15 }
 0x17b   :  { %v793_v20 = vpack.c.bf16 %v783_v17, %v778_v19 }
 0x17d   :  { %1156 = vmatmul.mubr.msk.bf16.gmra.mrb[20].mxu1 %vm809_vm4, %v793_v20 }
 0x236   :  { %v1145_v22 = vpop.f32.mrb[8].mxu1 }
 0x237   :  { %v877_v23 = vadd.f32 %v1145_v22, %v1027_v21  ;;  %v868_v25 = vpop.f32.mrb[9].mxu1 }
 0x238   :  { %v869_v26 = vadd.f32 %v1027_v21, %v868_v25  ;;  %v1146_v27 = vpop.f32.mrb[10].mxu1 }
 0x239   :  { %933 = vst [vmem:[#allocation2 + $0x10] sm:$0xff] %v877_v23  ;;  %v880_v28 = vadd.f32 %v1146_v27, %v1027_v21  ;;  %v871_v29 = vpop.f32.mrb[11].mxu1 }
 0x23a   :  { %931 = vst [vmem:[#allocation2] sm:$0xff] %v869_v26  ;;  %v872_v30 = vadd.f32 %v1027_v21, %v871_v29 }
 0x23b   :  { %934 = vst [vmem:[#allocation2 + $0x18] sm:$0xff] %v880_v28 }
 0x23c   :  { %932 = vst [vmem:[#allocation2 + $0x8] sm:$0xff] %v872_v30 }
 0x23e   :  { %v1149_v31 = vpop.f32.mrb[12].mxu1 }
 0x23f   :  { %v893_v32 = vadd.f32 %v1149_v31, %v1027_v21  ;;  %v884_v33 = vpop.f32.mrb[13].mxu1 }
 0x240   :  { %v885_v34 = vadd.f32 %v1027_v21, %v884_v33  ;;  %v1150_v35 = vpop.f32.mrb[14].mxu1 }
 0x241   :  { %937 = vst [vmem:[#allocation2 + $0x30] sm:$0xff] %v893_v32  ;;  %v896_v36 = vadd.f32 %v1150_v35, %v1027_v21  ;;  %v887_v37 = vpop.f32.mrb[15].mxu1 }
 0x242   :  { %935 = vst [vmem:[#allocation2 + $0x20] sm:$0xff] %v885_v34  ;;  %v888_v38 = vadd.f32 %v1027_v21, %v887_v37 }
 0x243   :  { %938 = vst [vmem:[#allocation2 + $0x38] sm:$0xff] %v896_v36 }
 0x244   :  { %936 = vst [vmem:[#allocation2 + $0x28] sm:$0xff] %v888_v38 }
 0x248   :  { %v1153_v39 = vpop.f32.mrb[16].mxu1 }
 0x249   :  { %v909_v40 = vadd.f32 %v1153_v39, %v1027_v21  ;;  %v900_v41 = vpop.f32.mrb[17].mxu1 }
 0x24a   :  { %v901_v42 = vadd.f32 %v1027_v21, %v900_v41  ;;  %v1154_v43 = vpop.f32.mrb[18].mxu1 }
 0x24b   :  { %941 = vst [vmem:[#allocation2 + $0x50] sm:$0xff] %v909_v40  ;;  %v912_v44 = vadd.f32 %v1154_v43, %v1027_v21  ;;  %v903_v45 = vpop.f32.mrb[19].mxu1 }
 0x24c   :  { %939 = vst [vmem:[#allocation2 + $0x40] sm:$0xff] %v901_v42  ;;  %v904_v46 = vadd.f32 %v1027_v21, %v903_v45 }
 0x24d   :  { %942 = vst [vmem:[#allocation2 + $0x58] sm:$0xff] %v912_v44 }
 0x24e   :  { %940 = vst [vmem:[#allocation2 + $0x48] sm:$0xff] %v904_v46 }
 0x250   :  { %v1157_v47 = vpop.f32.mrb[20].mxu1 }
 0x251   :  { %v925_v48 = vadd.f32 %v1157_v47, %v1027_v21  ;;  %v916_v49 = vpop.f32.mrb[21].mxu1 }
 0x252   :  { %v917_v50 = vadd.f32 %v1027_v21, %v916_v49  ;;  %v1158_v51 = vpop.f32.mrb[22].mxu1 }
 0x253   :  { %945 = vst [vmem:[#allocation2 + $0x70] sm:$0xff] %v925_v48  ;;  %v928_v52 = vadd.f32 %v1158_v51, %v1027_v21  ;;  %v919_v53 = vpop.f32.mrb[23].mxu1 }
 0x254   :  { %943 = vst [vmem:[#allocation2 + $0x60] sm:$0xff] %v917_v50  ;;  %v920_v54 = vadd.f32 %v1027_v21, %v919_v53 }
 0x255   :  { %946 = vst [vmem:[#allocation2 + $0x78] sm:$0xff] %v928_v52 }
 0x256   :  { %944 = vst [vmem:[#allocation2 + $0x68] sm:$0xff] %v920_v54 }
 0x257   :  { %1204 = shalt.err (!%p1201_p4)
}
 0x258   :  { %s1205_s13 = scalar_lea.hbm %s1462_s5, 2048 }
 0x259   :  { %p1206_p5 = scmp.ne.s32.totalorder %s1462_s5, %s1205_s13  ;;  %p1209_p6 = scmp.lt.u32.totalorder %s1205_s13, %s1462_s5 }
 0x25b   :  { %p1211_p7 = pnand %p1209_p6, %p1206_p5 }
 0x25d   :  { %1214 = shalt.err (!%p1211_p7)
}
 0x25e   :  { %s1220_s17 = smov 128   ;;  %s1221_s18 = smov 8  }
 0x25f   :  { %958 = dma.vmem_to_hbm [thread:$0]  %s953_s9, 2048, %s1462_s5, [#allocation3], %s1220_s17, %s1220_s17, %s1221_s18  }
 0x260   :  { %1215 = dma.done.wait [#allocation3], 2048  }
 0x261   :  { %1216 = vsyncadd [#allocation3], 4294965248 }
 0x262   :  { %962 = vsyncpa [#allocation3], 1 }

</bundles_post_ra>
